<compile_context>
chip_gen: v6e
topology: v6e:2x2x1
jax: 0.10.0
libtpu: 0.0.40
codegen_flags: <defaults>
</compile_context>

<pallas_src>
import functools

import jax
import jax.numpy as jnp
from jax.experimental import pallas as pl
from jax.experimental.pallas import tpu as pltpu

LANES = 128                  # vreg lane width: keep the last dim lane-dense
DEFAULT_BLOCK_ROWS = 4096    # 4096 x 128 x 4B = 2 MiB f32 block (sweet spot for mem-bound)


def _minmax_kernel(x_ref, o_ref, *, scale, offset):
    # Single fused multiply-add (min-max affine folded into scale/offset).
    x = x_ref[...].astype(jnp.float32)
    o_ref[...] = (x * scale + offset).astype(o_ref.dtype)


def minmax_normalization(x,
                         feature_min=0.0,
                         feature_max=1.0,
                         scaled_min=-1.0,
                         scaled_max=1.0,
                         block_rows=DEFAULT_BLOCK_ROWS):
    """Elementwise min-max normalization, any input shape."""
    # Fold the two affine steps into one: y = x*scale + offset.
    scale = float((scaled_max - scaled_min) / (feature_max - feature_min))
    offset = float(scaled_min - feature_min * scale)

    orig_shape = x.shape
    dtype = x.dtype

    # Lane-dense 2-D layout: [rows, 128].
    flat = x.reshape(-1)
    n = flat.shape[0]
    rows = pl.cdiv(n, LANES)
    rows_aligned = ((rows + 7) // 8) * 8          # (8, 128) sublane rule
    br = min(block_rows, rows_aligned)            # row-tile size (multiple of 8)
    padded_rows = ((rows_aligned + br - 1) // br) * br
    padded_n = padded_rows * LANES
    if padded_n != n:
        flat = jnp.pad(flat, (0, padded_n - n))
    x2d = flat.reshape(padded_rows, LANES)

    grid = (padded_rows // br,)
    kernel = functools.partial(_minmax_kernel, scale=scale, offset=offset)

    out2d = pl.pallas_call(
        kernel,
        out_shape=jax.ShapeDtypeStruct((padded_rows, LANES), dtype),
        grid_spec=pltpu.PrefetchScalarGridSpec(
            num_scalar_prefetch=0,
            grid=grid,
            in_specs=[pl.BlockSpec((br, LANES), lambda i: (i, 0))],
            out_specs=pl.BlockSpec((br, LANES), lambda i: (i, 0)),
        ),
        compiler_params=pltpu.CompilerParams(
            # Independent row tiles -> shard across both TCs on v7x.
            dimension_semantics=("parallel",),
        ),
        cost_estimate=pl.CostEstimate(
            flops=2 * padded_n,
            transcendentals=0,
            bytes_accessed=2 * padded_n * jnp.dtype(dtype).itemsize,
        ),
    )(x2d)

    out_flat = out2d.reshape(-1)
    if padded_n != n:
        out_flat = out_flat[:n]
    return out_flat.reshape(orig_shape)


def reference_minmax(x, feature_min=0.0, feature_max=1.0,
                     scaled_min=-1.0, scaled_max=1.0):
    x_norm = (x - feature_min) / (feature_max - feature_min)
    return x_norm * (scaled_max - scaled_min) + scaled_min


if __name__ == "__main__":
    key = jax.random.PRNGKey(0)
    # Small observation batch consistent with the module's typical use: [B, C, H, W].
    x = jax.random.uniform(key, (2, 4, 16, 16), jnp.float32)

    out = minmax_normalization(x, feature_min=0.0, feature_max=1.0,
                               scaled_min=-1.0, scaled_max=1.0)
    jax.block_until_ready(out)

    ref = reference_minmax(x, 0.0, 1.0, -1.0, 1.0)
    assert out.shape == x.shape
    assert out.dtype == x.dtype
    assert jnp.allclose(out, ref, atol=1e-6)

    print("KERNEL_OK")
</pallas_src>

<mosaic_0001>
module attributes {stable_mosaic.version = 11 : i64} {
  func.func @_minmax_kernel(%arg0: i32, %arg1: memref<16x128xf32, #tpu.memory_space<vmem>>, %arg2: memref<16x128xf32, #tpu.memory_space<vmem>>) attributes {dimension_semantics = [#tpu.dimension_semantics<parallel>], iteration_bounds = array<i64: 1>, scalar_prefetch = 0 : i64, scratch_operands = 0 : i64, tpu.core_type = #tpu.core_type<tc>, window_params = [{transform_indices = @transform_0, window_bounds = array<i64: 16, 128>}, {transform_indices = @transform_1, window_bounds = array<i64: 16, 128>}]} {
    %c0 = arith.constant 0 : index
    %c0_0 = arith.constant 0 : index
    %0 = vector.load %arg1[%c0, %c0_0] : memref<16x128xf32, #tpu.memory_space<vmem>>, vector<16x128xf32>
    %cst = arith.constant 2.000000e+00 : f32
    %1 = vector.broadcast %cst : f32 to vector<16x128xf32>
    %2 = arith.mulf %0, %1 : vector<16x128xf32>
    %cst_1 = arith.constant -1.000000e+00 : f32
    %3 = vector.broadcast %cst_1 : f32 to vector<16x128xf32>
    %4 = arith.addf %2, %3 : vector<16x128xf32>
    %c0_2 = arith.constant 0 : index
    %c0_3 = arith.constant 0 : index
    %5 = vector.load %arg2[%c0_2, %c0_3] : memref<16x128xf32, #tpu.memory_space<vmem>>, vector<16x128xf32>
    tpu.vector_store %arg2[%c0_2, %c0_3], %4 {strides = array<i32>} : memref<16x128xf32, #tpu.memory_space<vmem>>, vector<16x128xf32>,
    return
  }
  func.func @transform_0(%arg0: i32) -> (i32, i32) {
    %c0_i32 = arith.constant 0 : i32
    %c0_i32_0 = arith.constant 0 : i32
    return %arg0, %c0_i32 : i32, i32
  }
  func.func @transform_1(%arg0: i32) -> (i32, i32) {
    %c0_i32 = arith.constant 0 : i32
    %c0_i32_0 = arith.constant 0 : i32
    return %arg0, %c0_i32 : i32, i32
  }
}

</mosaic_0001>

<bundles_post_ra>
// kernel: tpu_custom_call.1
= control target key start
LH: loop header
LB: loop body
LE: loop exit
PB: predicated region body
PF: predicated region fallthrough
CT: control target
= control target key end

     0   :  { %6 = vsyncpa [#allocation3], 0  ;;  %s116_s0 = inlined_call_operand.hbm [shape: f32[16,128], index: 0, kind: input, shape index: {}]   ;;  %s117_s1 = inlined_call_operand.hbm [shape: f32[16,128], index: 1, kind: output, shape index: {}]  }
   0x1   :  { %7 = vsyncpa [#allocation4], 0  ;;  %s96_s6 = smov [#allocation2]  }
   0x2   :  { %s13_s7 = sshll.u32 %s96_s6, 4  ;;  %s14_s7 = int_to_ptr.vmem [resolvable:$true] %s13_s7 }
   0x3   :  { %s60_s8 = scalar_lea.vmem %s14_s7, 256  ;;  %p65_p1 = scmp.lt.s32.totalorder %s14_s7, %s14_s7 }
   0x4   :  { %p61_p0 = scmp.ne.s32.totalorder %s14_s7, %s60_s8  ;;  %p66_p2 = scmp.lt.s32.totalorder %s60_s8, %s60_s8 }
   0x6   :  { %p67_p3 = por %p66_p2, %p65_p1 }
   0x8   :  { %p68_p4 = pnand %p67_p3, %p61_p0 }
   0xa   :  { %71 = shalt.err (!%p68_p4)
}
   0xb   :  { %s97_s9 = smov 128   ;;  %s98_s10 = smov 8  }
   0xc   :  { %19 = dma.hbm_to_vmem [thread:$0]  %s116_s0, 256, %s14_s7, [#allocation3], %s97_s9, %s97_s9, %s98_s10  }
   0xd   :  { %92 = dma.done.wait [#allocation3], 256  }
   0xe   :  { %93 = vsyncadd [#allocation3], 4294967040  ;;  %v23_v0 = vld [vmem:[#allocation2] sm:$0xff]  ;;  %v24_v1 = vld [vmem:[#allocation2 + $0x8] sm:$0xff]  ;;  %s99_s13 = smov [#allocation5]  }
   0xf   :  { %s36_s14 = sshll.u32 %s99_s13, 4  ;;  %v25_v2 = vmul.f32 2.0, %v23_v0  ;;  %v26_v3 = vmul.f32 2.0, %v24_v1  ;;  %s37_s14 = int_to_ptr.vmem [resolvable:$true] %s36_s14 }
  0x10   :  { %s72_s15 = scalar_lea.vmem %s37_s14, 256  ;;  %p77_p6 = scmp.lt.s32.totalorder %s37_s14, %s37_s14 }
  0x11   :  { %v27_v4 = vadd.f32 -1.0, %v25_v2  ;;  %v28_v5 = vadd.f32 -1.0, %v26_v3  ;;  %p73_p5 = scmp.ne.s32.totalorder %s37_s14, %s72_s15  ;;  %p78_p7 = scmp.lt.s32.totalorder %s72_s15, %s72_s15 }
  0x13   :  { %29 = vst [vmem:[#allocation5] sm:$0xff] %v27_v4  ;;  %30 = vst [vmem:[#allocation5 + $0x8] sm:$0xff] %v28_v5  ;;  %p79_p8 = por %p78_p7, %p77_p6 }
  0x15   :  { %p80_p9 = pnand %p79_p8, %p73_p5 }
  0x17   :  { %83 = shalt.err (!%p80_p9)
}
  0x18   :  { %42 = dma.vmem_to_hbm [thread:$0]  %s37_s14, 256, %s117_s1, [#allocation4], %s97_s9, %s97_s9, %s98_s10  }
  0x19   :  { %94 = dma.done.wait [#allocation4], 256  }
  0x1a   :  { %95 = vsyncadd [#allocation4], 4294967040 }
  0x1b   :  { %46 = vsyncpa [#allocation3], 1 }
  0x1c   :  { %47 = vsyncpa [#allocation4], 1 }

</bundles_post_ra>
